<compile_context>
chip_gen: v7x
topology: tpu7x:2x2x1
jax: 0.10.0
libtpu: 0.0.40
codegen_flags: <defaults>
</compile_context>

<pallas_src>
import jax
import jax.numpy as jnp
from jax.experimental import pallas as pl
from jax.experimental.pallas import tpu as pltpu


def _rope_mul_kernel(x_ref, pos_ref, o_ref):
    x = x_ref[...]
    p = pos_ref[...]
    if p.ndim == x.ndim - 1:      # (TR, 128) vs (TB, TR, 128)
        p = p[None]
    o_ref[...] = x * p            # single broadcasted vmul; VPU only


def _build_pos_emb(h, w, d, dim, max_freq, dtype):
    """Plain-JAX transcription of the PyTorch pos_emb construction -> (N, D)."""
    n = h * w
    if len(range(0, dim, 2)) != 1:
        raise ValueError(
            "RotaryPositionEmbedding reference requires dim in {1, 2}: its "
            "`freqs_h.cos().view(1, 1, N)` only type-checks when "
            "ceil(dim/2) == 1 (theta is the scalar max_freq**0 == 1.0).")
    theta = jnp.asarray(max_freq, jnp.float32) ** (
        -jnp.arange(0, dim, 2, dtype=jnp.float32) / dim)      # == [1.0]
    y_pos = jnp.arange(h, dtype=jnp.float32)
    x_pos = jnp.arange(w, dtype=jnp.float32)
    y_grid, x_grid = jnp.meshgrid(y_pos, x_pos, indexing="ij")
    fh = jnp.outer(y_grid.reshape(-1), theta).reshape(n)
    fw = jnp.outer(x_grid.reshape(-1), theta).reshape(n)
    # Channel pattern repeats every 4: [cos(fh), sin(fh), cos(fw), sin(fw)].
    base = jnp.stack([jnp.cos(fh), jnp.sin(fh), jnp.cos(fw), jnp.sin(fw)],
                     axis=-1)                                  # (N, 4)
    reps = -(-d // 4)
    pos = jnp.tile(base, (1, reps))[:, :d]                     # (N, D)
    # PyTorch writes fp32 cos/sin into torch.zeros_like(x) -> cast to x.dtype.
    return pos.astype(dtype)


def _vmem_budget():
    """Generation-aware (scoped VMEM limit, per-block budget, multi-TC?)."""
    vmem_cap = 64 << 20                      # conservative default (v7x-sized)
    try:
        info = pltpu.get_tpu_info()
        cap = getattr(info, "vmem_capacity_bytes", None)
        if cap:
            vmem_cap = int(cap)
    except Exception:
        pass
    try:
        kind = jax.devices()[0].device_kind.lower()
    except Exception:
        kind = ""
    multi_tc = "v7" in kind                  # v7x: 2 TensorCores per chip
    # Scoped-VMEM limit: ~75% of physical, capped at 96 MiB.
    vmem_limit = min(96 << 20, (vmem_cap * 3) // 4)
    # Worst case live VMEM ~ 4 double-buffered x/out blocks + 2 pos blocks.
    block_budget = min(12 << 20, vmem_limit // 7)
    return vmem_limit, block_budget, multi_tc


def _pick_tiles(bh, r, itemsize, sub, budget_bytes, multi_tc):
    """Pick (TB, TR) so a (TB, TR, 128) block fits the budget, preferring the
    largest blocks; on multi-TC chips prefer >= 4 total grid steps (>= 2 min)
    without shrinking blocks below ~1 MiB once both cores are busy."""
    row_bytes = 128 * itemsize
    slab_bytes = r * row_bytes
    # Legal TR: divisors of R that are multiples of the sublane pack, or R itself.
    tr_opts = sorted({t for t in range(sub, r + 1, sub) if r % t == 0} | {r})
    tb_opts = [t for t in range(1, bh + 1) if bh % t == 0]

    if slab_bytes <= budget_bytes:
        TR = r
        fitting = [t for t in tb_opts if t * slab_bytes <= budget_bytes]
        TB = max(fitting) if fitting else 1
    else:
        TB = 1
        fitting = [t for t in tr_opts if t * row_bytes <= budget_bytes]
        TR = max(fitting) if fitting else min(tr_opts)   # rare: accept over-budget

    if multi_tc:
        def nsteps(tb, tr):
            return (bh // tb) * (r // tr)

        while nsteps(TB, TR) < 4:
            if TB > 1:
                kind, val = "tb", max(t for t in tb_opts if t < TB)
            elif TR > min(tr_opts):
                kind, val = "tr", max(t for t in tr_opts if t < TR)
            else:
                break
            new_bytes = (val * TR if kind == "tb" else TB * val) * row_bytes
            if new_bytes < (1 << 20) and nsteps(TB, TR) >= 2:
                break
            if kind == "tb":
                TB = val
            else:
                TR = val
    return TB, TR


def rotary_position_embedding(x, h, w, dim=2, max_freq=10000.0):
    """Pallas TPU equivalent of RotaryPositionEmbedding(dim, max_freq).forward(x, h, w)."""
    B, H, N, D = x.shape
    assert N == h * w, f"Sequence length {N} must equal h*w ({h}*{w}={h * w})"

    pos = _build_pos_emb(h, w, D, dim, max_freq, x.dtype)      # (N, D), hoisted

    BH = B * H
    itemsize = jnp.dtype(x.dtype).itemsize
    sub = max(8, 32 // max(1, itemsize))                       # 8 f32 / 16 bf16 / 32 i8
    vmem_limit, block_budget, multi_tc = _vmem_budget()

    cost = pl.CostEstimate(flops=BH * N * D, transcendentals=0,
                           bytes_accessed=(2 * BH * N * D + N * D) * itemsize)

    if (N * D) % 128 == 0:
        # Lane-dense 3D layout: (BH, R, 128) with an R grid axis varying slowest.
        L = 128
        R = (N * D) // L
        TB, TR = _pick_tiles(BH, R, itemsize, sub, block_budget, multi_tc)
        xf = x.reshape(BH, R, L)
        posf = pos.reshape(R, L)
        grid = (R // TR, BH // TB)           # pos-dependent axis is the slow one
        in_specs = [
            pl.BlockSpec((TB, TR, L), lambda r, b: (b, r, 0)),
            pl.BlockSpec((TR, L), lambda r, b: (r, 0)),   # depends only on slow axis
        ]
        out_specs = pl.BlockSpec((TB, TR, L), lambda r, b: (b, r, 0))
        dims = ("parallel", "parallel")
        out_flat_shape = (BH, R, L)
    else:
        # Fallback: flatten to 2D (BH, N*D); only the tail vreg column is masked.
        ND = N * D
        xf = x.reshape(BH, ND)
        posf = pos.reshape(1, ND)
        slab = ND * itemsize
        tb_opts = [t for t in range(1, BH + 1)
                   if BH % t == 0 and (t % sub == 0 or t == BH)]
        fitting = [t for t in tb_opts if t * slab <= block_budget]
        TB = max(fitting) if fitting else min(tb_opts)
        if multi_tc and BH // TB < 2:
            smaller = [t for t in tb_opts if t < TB]
            if smaller:
                TB = max(smaller)
        grid = (BH // TB,)
        in_specs = [
            pl.BlockSpec((TB, ND), lambda b: (b, 0)),
            pl.BlockSpec((1, ND), lambda b: (0, 0)),
        ]
        out_specs = pl.BlockSpec((TB, ND), lambda b: (b, 0))
        dims = ("parallel",)
        out_flat_shape = (BH, ND)

    out = pl.pallas_call(
        _rope_mul_kernel,
        out_shape=jax.ShapeDtypeStruct(out_flat_shape, x.dtype),
        grid_spec=pltpu.PrefetchScalarGridSpec(
            num_scalar_prefetch=0,
            grid=grid,
            in_specs=in_specs,
            out_specs=out_specs,
        ),
        compiler_params=pltpu.CompilerParams(
            dimension_semantics=dims,
            vmem_limit_bytes=int(vmem_limit),
        ),
        cost_estimate=cost,
    )(xf, posf)
    return out.reshape(B, H, N, D)


def _reference(x, h, w, dim=2, max_freq=10000.0):
    """Pure-JAX transcription of the PyTorch forward, for verification."""
    B, H, N, D = x.shape
    pos_emb = _build_pos_emb(h, w, D, dim, max_freq, x.dtype)   # (N, D)
    return x * pos_emb[None, None]


if __name__ == "__main__":
    # Small shapes consistent with the forward: x (B, heads, N=h*w, D)
    B, H, h, w, D = 2, 4, 8, 8, 32
    N = h * w
    key = jax.random.PRNGKey(0)
    x = jax.random.normal(key, (B, H, N, D), dtype=jnp.float32)

    out = rotary_position_embedding(x, h, w, dim=2, max_freq=10000.0)
    out = jax.block_until_ready(out)

    ref = _reference(x, h, w, dim=2, max_freq=10000.0)
    assert out.shape == x.shape and out.dtype == x.dtype
    assert jnp.allclose(out, ref, atol=1e-5, rtol=1e-5), "mismatch vs reference"
    print("KERNEL_OK")
</pallas_src>

<mosaic_0001>
module attributes {stable_mosaic.version = 11 : i64} {
  func.func @_rope_mul_kernel(%arg0: i32, %arg1: i32, %arg2: memref<8x16x128xf32, #tpu.memory_space<vmem>>, %arg3: memref<16x128xf32, #tpu.memory_space<vmem>>, %arg4: memref<8x16x128xf32, #tpu.memory_space<vmem>>) attributes {dimension_semantics = [#tpu.dimension_semantics<parallel>, #tpu.dimension_semantics<parallel>], iteration_bounds = array<i64: 1, 1>, scalar_prefetch = 0 : i64, scratch_operands = 0 : i64, tpu.core_type = #tpu.core_type<tc>, window_params = [{transform_indices = @transform_0, window_bounds = array<i64: 8, 16, 128>}, {transform_indices = @transform_1, window_bounds = array<i64: 16, 128>}, {transform_indices = @transform_2, window_bounds = array<i64: 8, 16, 128>}]} {
    %c0 = arith.constant 0 : index
    %c0_0 = arith.constant 0 : index
    %c0_1 = arith.constant 0 : index
    %0 = vector.load %arg2[%c0, %c0_0, %c0_1] : memref<8x16x128xf32, #tpu.memory_space<vmem>>, vector<8x16x128xf32>
    %c0_2 = arith.constant 0 : index
    %c0_3 = arith.constant 0 : index
    %1 = vector.load %arg3[%c0_2, %c0_3] : memref<16x128xf32, #tpu.memory_space<vmem>>, vector<16x128xf32>
    %2 = vector.shape_cast %1 : vector<16x128xf32> to vector<1x16x128xf32>
    %3 = vector.broadcast %2 : vector<1x16x128xf32> to vector<8x16x128xf32>
    %4 = arith.mulf %0, %3 : vector<8x16x128xf32>
    %c0_4 = arith.constant 0 : index
    %c0_5 = arith.constant 0 : index
    %c0_6 = arith.constant 0 : index
    %5 = vector.load %arg4[%c0_4, %c0_5, %c0_6] : memref<8x16x128xf32, #tpu.memory_space<vmem>>, vector<8x16x128xf32>
    tpu.vector_store %arg4[%c0_4, %c0_5, %c0_6], %4 {strides = array<i32>} : memref<8x16x128xf32, #tpu.memory_space<vmem>>, vector<8x16x128xf32>,
    return
  }
  func.func @transform_0(%arg0: i32, %arg1: i32) -> (i32, i32, i32) {
    %c0_i32 = arith.constant 0 : i32
    %c0_i32_0 = arith.constant 0 : i32
    return %arg1, %arg0, %c0_i32 : i32, i32, i32
  }
  func.func @transform_1(%arg0: i32, %arg1: i32) -> (i32, i32) {
    %c0_i32 = arith.constant 0 : i32
    %c0_i32_0 = arith.constant 0 : i32
    return %arg0, %c0_i32 : i32, i32
  }
  func.func @transform_2(%arg0: i32, %arg1: i32) -> (i32, i32, i32) {
    %c0_i32 = arith.constant 0 : i32
    %c0_i32_0 = arith.constant 0 : i32
    return %arg1, %arg0, %c0_i32 : i32, i32, i32
  }
}

</mosaic_0001>

<bundles_post_ra>
// kernel: tpu_custom_call.1
= control target key start
LH: loop header
LB: loop body
LE: loop exit
PB: predicated region body
PF: predicated region fallthrough
CT: control target
= control target key end

     0   :  { %7 = vsyncpa [#allocation3], 0  ;;  %s250_s0 = inlined_call_operand.hbm [shape: f32[8,16,128], index: 0, kind: input, shape index: {}]   ;;  %s251_s1 = inlined_call_operand.hbm [shape: f32[16,128], index: 1, kind: input, shape index: {}]   ;;  %s252_s2 = inlined_call_operand.hbm [shape: f32[8,16,128], index: 2, kind: output, shape index: {}]  }
   0x1   :  { %8 = vsyncpa [#allocation6], 0 }
   0x2   :  { %9 = vsyncpa [#allocation4], 0  ;;  %s185_s9 = smov [#allocation2]   ;;  %s113_s13 = scalar_lea.hbm %s250_s0, 2048 }
   0x3   :  { %s15_s10 = sshll.u32 %s185_s9, 4  ;;  %p114_p0 = scmp.ne.s32.totalorder %s250_s0, %s113_s13  ;;  %s16_s10 = int_to_ptr.vmem [resolvable:$true] %s15_s10 }
   0x4   :  { %p117_p1 = scmp.lt.u32.totalorder %s113_s13, %s250_s0 }
   0x6   :  { %p119_p2 = pnand %p117_p1, %p114_p0 }
   0x8   :  { %122 = shalt.err (!%p119_p2)
}
   0x9   :  { %s123_s18 = scalar_lea.vmem %s16_s10, 2048  ;;  %p128_p4 = scmp.lt.s32.totalorder %s16_s10, %s16_s10 }
   0xa   :  { %p124_p3 = scmp.ne.s32.totalorder %s16_s10, %s123_s18  ;;  %p129_p5 = scmp.lt.s32.totalorder %s123_s18, %s123_s18 }
   0xc   :  { %p130_p6 = por %p129_p5, %p128_p4 }
   0xe   :  { %p131_p7 = pnand %p130_p6, %p124_p3 }
  0x10   :  { %134 = shalt.err (!%p131_p7)
}
  0x11   :  { %s186_s19 = smov 128   ;;  %s187_s20 = smov 8  }
  0x12   :  { %21 = dma.hbm_to_vmem [thread:$0]  %s250_s0, 2048, %s16_s10, [#allocation3], %s186_s19, %s186_s19, %s187_s20  }
  0x13   :  { %s188_s23 = smov [#allocation5]   ;;  %s135_s27 = scalar_lea.hbm %s251_s1, 256 }
  0x14   :  { %s27_s24 = sshll.u32 %s188_s23, 4  ;;  %p136_p8 = scmp.ne.s32.totalorder %s251_s1, %s135_s27  ;;  %s28_s24 = int_to_ptr.vmem [resolvable:$true] %s27_s24 }
  0x15   :  { %p139_p9 = scmp.lt.u32.totalorder %s135_s27, %s251_s1 }
  0x17   :  { %p141_p10 = pnand %p139_p9, %p136_p8 }
  0x19   :  { %144 = shalt.err (!%p141_p10)
}
  0x1a   :  { %s145_s4 = scalar_lea.vmem %s28_s24, 256  ;;  %p150_p12 = scmp.lt.s32.totalorder %s28_s24, %s28_s24 }
  0x1b   :  { %p146_p11 = scmp.ne.s32.totalorder %s28_s24, %s145_s4  ;;  %p151_p13 = scmp.lt.s32.totalorder %s145_s4, %s145_s4 }
  0x1d   :  { %p152_p0 = por %p151_p13, %p150_p12 }
  0x1f   :  { %p153_p1 = pnand %p152_p0, %p146_p11 }
  0x21   :  { %156 = shalt.err (!%p153_p1)
}
  0x22   :  { %33 = dma.hbm_to_vmem [thread:$0]  %s251_s1, 256, %s28_s24, [#allocation6], %s186_s19, %s186_s19, %s187_s20  }
  0x23   :  { %179 = dma.done.wait [#allocation3], 2048  }
  0x24   :  { %180 = vsyncadd [#allocation3], 4294965248 }
  0x25   :  { %181 = dma.done.wait [#allocation6], 256  }
  0x26   :  { %182 = vsyncadd [#allocation6], 4294967040  ;;  %v40_v0 = vld [vmem:[#allocation2] sm:$0xff]  ;;  %v41_v2 = vld [vmem:[#allocation2 + $0x8] sm:$0xff]  ;;  %s189_s1 = smov [#allocation7]  }
  0x27   :  { %v56_v1 = vld [vmem:[#allocation5] sm:$0xff]  ;;  %v57_v4 = vld [vmem:[#allocation5 + $0x8] sm:$0xff]  ;;  %v42_v5 = vld [vmem:[#allocation2 + $0x10] sm:$0xff]  ;;  %s95_s6 = sshll.u32 %s189_s1, 4  ;;  %s96_s6 = int_to_ptr.vmem [resolvable:$true] %s95_s6 }
  0x28   :  { %v58_v3 = vmul.f32 %v56_v1, %v40_v0  ;;  %v43_v6 = vld [vmem:[#allocation2 + $0x18] sm:$0xff]  ;;  %v59_v7 = vmul.f32 %v57_v4, %v41_v2  ;;  %v60_v8 = vmul.f32 %v56_v1, %v42_v5  ;;  %v44_v10 = vld [vmem:[#allocation2 + $0x20] sm:$0xff]  ;;  %v45_v11 = vld [vmem:[#allocation2 + $0x28] sm:$0xff]  ;;  %s157_s7 = scalar_lea.vmem %s96_s6, 2048  ;;  %p162_p3 = scmp.lt.s32.totalorder %s96_s6, %s96_s6 }
  0x29   :  { %v61_v9 = vmul.f32 %v57_v4, %v43_v6  ;;  %v46_v12 = vld [vmem:[#allocation2 + $0x30] sm:$0xff]  ;;  %v62_v13 = vmul.f32 %v56_v1, %v44_v10  ;;  %v63_v14 = vmul.f32 %v57_v4, %v45_v11  ;;  %v47_v16 = vld [vmem:[#allocation2 + $0x38] sm:$0xff]  ;;  %v48_v17 = vld [vmem:[#allocation2 + $0x40] sm:$0xff]  ;;  %p158_p2 = scmp.ne.s32.totalorder %s96_s6, %s157_s7  ;;  %p163_p4 = scmp.lt.s32.totalorder %s157_s7, %s157_s7 }
  0x2a   :  { %74 = vst [vmem:[#allocation7] sm:$0xff] %v58_v3  ;;  %v64_v15 = vmul.f32 %v56_v1, %v46_v12  ;;  %v49_v18 = vld [vmem:[#allocation2 + $0x48] sm:$0xff]  ;;  %75 = vst [vmem:[#allocation7 + $0x8] sm:$0xff] %v59_v7  ;;  %v65_v19 = vmul.f32 %v57_v4, %v47_v16  ;;  %v66_v20 = vmul.f32 %v56_v1, %v48_v17  ;;  %v50_v22 = vld [vmem:[#allocation2 + $0x50] sm:$0xff] }
  0x2b   :  { %76 = vst [vmem:[#allocation7 + $0x10] sm:$0xff] %v60_v8  ;;  %77 = vst [vmem:[#allocation7 + $0x18] sm:$0xff] %v61_v9  ;;  %v67_v21 = vmul.f32 %v57_v4, %v49_v18  ;;  %v51_v23 = vld [vmem:[#allocation2 + $0x58] sm:$0xff]  ;;  %v52_v24 = vld [vmem:[#allocation2 + $0x60] sm:$0xff]  ;;  %v68_v25 = vmul.f32 %v56_v1, %v50_v22  ;;  %p164_p5 = por %p163_p4, %p162_p3 }
  0x2c   :  { %78 = vst [vmem:[#allocation7 + $0x20] sm:$0xff] %v62_v13  ;;  %79 = vst [vmem:[#allocation7 + $0x28] sm:$0xff] %v63_v14  ;;  %v69_v26 = vmul.f32 %v57_v4, %v51_v23  ;;  %v70_v27 = vmul.f32 %v56_v1, %v52_v24  ;;  %v53_v28 = vld [vmem:[#allocation2 + $0x68] sm:$0xff]  ;;  %v54_v29 = vld [vmem:[#allocation2 + $0x70] sm:$0xff] }
  0x2d   :  { %80 = vst [vmem:[#allocation7 + $0x30] sm:$0xff] %v64_v15  ;;  %v55_v30 = vld [vmem:[#allocation2 + $0x78] sm:$0xff]  ;;  %81 = vst [vmem:[#allocation7 + $0x38] sm:$0xff] %v65_v19  ;;  %v71_v31 = vmul.f32 %v57_v4, %v53_v28  ;;  %v72_v32 = vmul.f32 %v56_v1, %v54_v29  ;;  %p165_p6 = pnand %p164_p5, %p158_p2 }
  0x2e   :  { %82 = vst [vmem:[#allocation7 + $0x40] sm:$0xff] %v66_v20  ;;  %83 = vst [vmem:[#allocation7 + $0x48] sm:$0xff] %v67_v21  ;;  %v73_v33 = vmul.f32 %v57_v4, %v55_v30 }
  0x2f   :  { %84 = vst [vmem:[#allocation7 + $0x50] sm:$0xff] %v68_v25  ;;  %85 = vst [vmem:[#allocation7 + $0x58] sm:$0xff] %v69_v26 }
  0x30   :  { %86 = vst [vmem:[#allocation7 + $0x60] sm:$0xff] %v70_v27  ;;  %87 = vst [vmem:[#allocation7 + $0x68] sm:$0xff] %v71_v31 }
  0x31   :  { %88 = vst [vmem:[#allocation7 + $0x70] sm:$0xff] %v72_v32  ;;  %89 = vst [vmem:[#allocation7 + $0x78] sm:$0xff] %v73_v33 }
  0x32   :  { %168 = shalt.err (!%p165_p6)
}
  0x33   :  { %s169_s10 = scalar_lea.hbm %s252_s2, 2048 }
  0x34   :  { %p170_p7 = scmp.ne.s32.totalorder %s252_s2, %s169_s10  ;;  %p173_p8 = scmp.lt.u32.totalorder %s169_s10, %s252_s2 }
  0x36   :  { %p175_p9 = pnand %p173_p8, %p170_p7 }
  0x38   :  { %178 = shalt.err (!%p175_p9)
}
  0x39   :  { %101 = dma.vmem_to_hbm [thread:$0]  %s96_s6, 2048, %s252_s2, [#allocation4], %s186_s19, %s186_s19, %s187_s20  }
  0x3a   :  { %183 = dma.done.wait [#allocation4], 2048  }
  0x3b   :  { %184 = vsyncadd [#allocation4], 4294965248 }
  0x3c   :  { %105 = vsyncpa [#allocation3], 1 }
  0x3d   :  { %106 = vsyncpa [#allocation6], 1 }
  0x3e   :  { %107 = vsyncpa [#allocation4], 1 }

</bundles_post_ra>
